<compile_context>
chip_gen: v6e
topology: v6e:2x2x1
jax: 0.10.0
libtpu: 0.0.40
codegen_flags: <defaults>
</compile_context>

<pallas_src>
import jax
import jax.numpy as jnp
from jax.experimental import pallas as pl
from jax.experimental.pallas import tpu as pltpu

D_IN, H1, H2, D_OUT = 28 * 28, 100, 50, 10
# Lane-padded (multiple-of-128) feature dims used for the internal compute.
H1_P, H2_P, D_OUT_P = 128, 128, 128


def _round_up(n, m):
    return ((n + m - 1) // m) * m


def _pad2d(a, rows, cols):
    r, c = a.shape
    return jnp.pad(a, ((0, rows - r), (0, cols - c)))


def prepare_params(w1, b1, w2, b2, w3, b3, operand_dtype=jnp.float32):
    """One-time parameter prep (call once, reuse every forward).

    Zero-pads feature dims to 128-lane multiples and optionally casts the
    matmul operands to `operand_dtype` (e.g. jnp.bfloat16 on v5e/v6e/v7x for
    half the weight/x DMA bytes; accumulation stays f32).  Padded weight rows
    multiply zero activations and padded bias entries are zero, so the valid
    output columns are bit-identical to the unpadded computation (for f32).
    Biases stay f32 — they are added to the f32 accumulator.
    """
    w1p = _pad2d(w1, D_IN, H1_P).astype(operand_dtype)
    w2p = _pad2d(w2, H1_P, H2_P).astype(operand_dtype)
    w3p = _pad2d(w3, H2_P, D_OUT_P).astype(operand_dtype)
    b1p = _pad2d(b1.reshape(1, H1), 1, H1_P)
    b2p = _pad2d(b2.reshape(1, H2), 1, H2_P)
    b3p = _pad2d(b3.reshape(1, D_OUT), 1, D_OUT_P)
    return w1p, b1p, w2p, b2p, w3p, b3p


def mlp_kernel(x_ref, w1_ref, b1_ref, w2_ref, b2_ref, w3_ref, b3_ref, o_ref):
    cdt = w1_ref.dtype  # MXU operand dtype (f32 or bf16); accumulation is f32.
    # fc1 + ReLU (MXU matmul, f32 accumulation; bias/ReLU on the VPU).
    h = jnp.dot(x_ref[...], w1_ref[...], preferred_element_type=jnp.float32)
    h = jnp.maximum(h + b1_ref[...], 0.0)
    # fc2 + ReLU (cast activations to operand dtype so bf16 params stay on the
    # bf16 MXU path instead of silently promoting to f32 matmuls).
    h = jnp.dot(h.astype(cdt), w2_ref[...], preferred_element_type=jnp.float32)
    h = jnp.maximum(h + b2_ref[...], 0.0)
    # fc3 (no activation).
    h = jnp.dot(h.astype(cdt), w3_ref[...], preferred_element_type=jnp.float32)
    h = h + b3_ref[...]
    # Store only the 10 valid logits (narrow masked store; avoids a separate
    # post-kernel slice pass over a padded (B, 128) HBM buffer).
    o_ref[...] = h[:, :D_OUT].astype(o_ref.dtype)


def mlp_forward(x, params, *, block_b=1024):
    """Fused MLP forward.  `params` comes from `prepare_params` (called once).

    block_b: max batch rows per grid step (default 1024 for f32 operands; ~2048
    is reasonable for bf16).  The tile is additionally capped so the grid has
    at least two parallel steps when B >= 16, letting v7x shard across its two
    TensorCores.
    """
    w1p, b1p, w2p, b2p, w3p, b3p = params
    B = x.shape[0]
    operand_dtype = w1p.dtype
    if x.dtype != operand_dtype:
        raise ValueError(
            f"x dtype {x.dtype} must match prepared operand dtype "
            f"{operand_dtype}; deliver x already in that dtype (no hidden "
            "wrapper cast => no extra HBM pass over x).")

    # Sublane-aligned batch tile; >= 2 grid steps when B >= 16 (v7x megacore).
    block_b = max(8, (block_b // 8) * 8)
    block_b = min(block_b, max(8, _round_up(pl.cdiv(B, 2), 8)))
    if block_b >= B:
        block_b = B  # single whole-batch block (block == full dim -> legal)
    grid = (pl.cdiv(B, block_b),)

    op_bytes = jnp.dtype(operand_dtype).itemsize
    flops = 2 * B * (D_IN * H1_P + H1_P * H2_P + H2_P * D_OUT_P)
    bytes_accessed = (
        B * D_IN * op_bytes                                          # x in
        + B * D_OUT * 4                                              # logits out
        + (D_IN * H1_P + H1_P * H2_P + H2_P * D_OUT_P) * op_bytes    # weights
        + (H1_P + H2_P + D_OUT_P) * 4                                # biases
    )

    return pl.pallas_call(
        mlp_kernel,
        out_shape=jax.ShapeDtypeStruct((B, D_OUT), jnp.float32),
        grid_spec=pltpu.PrefetchScalarGridSpec(
            num_scalar_prefetch=0,
            grid=grid,
            in_specs=[
                # x tile: the only array that varies with the grid index.
                pl.BlockSpec((block_b, D_IN), lambda i: (i, 0)),
                # Weights / biases: constant index_maps -> fetched once and
                # held VMEM-resident across all grid steps (~0.5 MB padded f32).
                pl.BlockSpec((D_IN, H1_P), lambda i: (0, 0)),
                pl.BlockSpec((1, H1_P), lambda i: (0, 0)),
                pl.BlockSpec((H1_P, H2_P), lambda i: (0, 0)),
                pl.BlockSpec((1, H2_P), lambda i: (0, 0)),
                pl.BlockSpec((H2_P, D_OUT_P), lambda i: (0, 0)),
                pl.BlockSpec((1, D_OUT_P), lambda i: (0, 0)),
            ],
            # Output block last dim == full array dim (10) -> legal; only the
            # valid logits ever touch HBM.
            out_specs=pl.BlockSpec((block_b, D_OUT), lambda i: (i, 0)),
        ),
        compiler_params=pltpu.CompilerParams(
            dimension_semantics=("parallel",),
        ),
        cost_estimate=pl.CostEstimate(
            flops=flops, transcendentals=0, bytes_accessed=bytes_accessed),
    )(x, w1p, b1p, w2p, b2p, w3p, b3p)


def init_params(key):
    """Deterministic init mirroring nn.Linear default (uniform +/- 1/sqrt(fan_in))."""
    ks = jax.random.split(key, 6)

    def uniform(k, shape, fan_in):
        bound = 1.0 / jnp.sqrt(fan_in)
        return jax.random.uniform(k, shape, jnp.float32, -bound, bound)

    w1 = uniform(ks[0], (D_IN, H1), D_IN)
    b1 = uniform(ks[1], (H1,), D_IN)
    w2 = uniform(ks[2], (H1, H2), H1)
    b2 = uniform(ks[3], (H2,), H1)
    w3 = uniform(ks[4], (H2, D_OUT), H2)
    b3 = uniform(ks[5], (D_OUT,), H2)
    return w1, b1, w2, b2, w3, b3


def reference_forward(x, w1, b1, w2, b2, w3, b3):
    h = jnp.maximum(x @ w1 + b1, 0.0)
    h = jnp.maximum(h @ w2 + b2, 0.0)
    return h @ w3 + b3


if __name__ == "__main__":
    key = jax.random.PRNGKey(0)
    k_x, k_p = jax.random.split(key)

    raw = init_params(k_p)
    # One-time param prep (f32 operands here so the check vs. the f32 JAX
    # reference is tight; pass operand_dtype=jnp.bfloat16 and bf16 x for the
    # memory-bound fast path on real workloads).
    params = jax.block_until_ready(prepare_params(*raw))

    # Case 1: tiny batch -> single whole-batch block.
    B1 = 8
    x1 = jax.random.normal(k_x, (B1, D_IN), jnp.float32)
    out1 = jax.block_until_ready(mlp_forward(x1, params))
    assert out1.shape == (B1, D_OUT)
    assert jnp.allclose(out1, reference_forward(x1, *raw), atol=1e-4, rtol=1e-4), \
        "mismatch vs JAX reference (B=8)"

    # Case 2: multi-step grid (>= 2 parallel steps, partial last block).
    B2 = 20
    x2 = jax.random.normal(k_x, (B2, D_IN), jnp.float32)
    out2 = jax.block_until_ready(mlp_forward(x2, params))
    assert out2.shape == (B2, D_OUT)
    assert jnp.allclose(out2, reference_forward(x2, *raw), atol=1e-4, rtol=1e-4), \
        "mismatch vs JAX reference (B=20)"

    print("KERNEL_OK")
</pallas_src>

<mosaic_0001>
module attributes {stable_mosaic.version = 11 : i64} {
  func.func @mlp_kernel(%arg0: i32, %arg1: memref<8x784xf32, #tpu.memory_space<vmem>>, %arg2: memref<784x128xf32, #tpu.memory_space<vmem>>, %arg3: memref<1x128xf32, #tpu.memory_space<vmem>>, %arg4: memref<128x128xf32, #tpu.memory_space<vmem>>, %arg5: memref<1x128xf32, #tpu.memory_space<vmem>>, %arg6: memref<128x128xf32, #tpu.memory_space<vmem>>, %arg7: memref<1x128xf32, #tpu.memory_space<vmem>>, %arg8: memref<8x10xf32, #tpu.memory_space<vmem>>) attributes {dimension_semantics = [#tpu.dimension_semantics<parallel>], iteration_bounds = array<i64: 1>, scalar_prefetch = 0 : i64, scratch_operands = 0 : i64, tpu.core_type = #tpu.core_type<tc>, window_params = [{transform_indices = @transform_0, window_bounds = array<i64: 8, 784>}, {pipeline_mode = #tpu.pipeline_mode<synchronous>, transform_indices = @transform_1, window_bounds = array<i64: 784, 128>}, {pipeline_mode = #tpu.pipeline_mode<synchronous>, transform_indices = @transform_2, window_bounds = array<i64: 1, 128>}, {pipeline_mode = #tpu.pipeline_mode<synchronous>, transform_indices = @transform_3, window_bounds = array<i64: 128, 128>}, {pipeline_mode = #tpu.pipeline_mode<synchronous>, transform_indices = @transform_4, window_bounds = array<i64: 1, 128>}, {pipeline_mode = #tpu.pipeline_mode<synchronous>, transform_indices = @transform_5, window_bounds = array<i64: 128, 128>}, {pipeline_mode = #tpu.pipeline_mode<synchronous>, transform_indices = @transform_6, window_bounds = array<i64: 1, 128>}, {transform_indices = @transform_7, window_bounds = array<i64: 8, 10>}]} {
    %c0 = arith.constant 0 : index
    %c0_0 = arith.constant 0 : index
    %0 = vector.load %arg1[%c0, %c0_0] : memref<8x784xf32, #tpu.memory_space<vmem>>, vector<8x784xf32>
    %c0_1 = arith.constant 0 : index
    %c0_2 = arith.constant 0 : index
    %1 = vector.load %arg2[%c0_1, %c0_2] : memref<784x128xf32, #tpu.memory_space<vmem>>, vector<784x128xf32>
    %cst = arith.constant dense<0.000000e+00> : vector<8x128xf32>
    %2 = tpu.matmul %0, %1, %cst {dimension_numbers = #tpu.dot_dimension_numbers<[1], [0], [0], [1], [0, 0, 1, 1], [], []>} : vector<8x784xf32>, vector<784x128xf32>, vector<8x128xf32> -> vector<8x128xf32>
    %c0_3 = arith.constant 0 : index
    %c0_4 = arith.constant 0 : index
    %3 = vector.load %arg3[%c0_3, %c0_4] : memref<1x128xf32, #tpu.memory_space<vmem>>, vector<1x128xf32>
    %4 = vector.broadcast %3 : vector<1x128xf32> to vector<8x128xf32>
    %5 = arith.addf %2, %4 : vector<8x128xf32>
    %cst_5 = arith.constant 0.000000e+00 : f32
    %6 = vector.broadcast %cst_5 : f32 to vector<8x128xf32>
    %7 = arith.maximumf %5, %6 : vector<8x128xf32>
    %c0_6 = arith.constant 0 : index
    %c0_7 = arith.constant 0 : index
    %8 = vector.load %arg4[%c0_6, %c0_7] : memref<128x128xf32, #tpu.memory_space<vmem>>, vector<128x128xf32>
    %cst_8 = arith.constant dense<0.000000e+00> : vector<8x128xf32>
    %9 = tpu.matmul %7, %8, %cst_8 {dimension_numbers = #tpu.dot_dimension_numbers<[1], [0], [0], [1], [0, 0, 1, 1], [], []>} : vector<8x128xf32>, vector<128x128xf32>, vector<8x128xf32> -> vector<8x128xf32>
    %c0_9 = arith.constant 0 : index
    %c0_10 = arith.constant 0 : index
    %10 = vector.load %arg5[%c0_9, %c0_10] : memref<1x128xf32, #tpu.memory_space<vmem>>, vector<1x128xf32>
    %11 = vector.broadcast %10 : vector<1x128xf32> to vector<8x128xf32>
    %12 = arith.addf %9, %11 : vector<8x128xf32>
    %cst_11 = arith.constant 0.000000e+00 : f32
    %13 = vector.broadcast %cst_11 : f32 to vector<8x128xf32>
    %14 = arith.maximumf %12, %13 : vector<8x128xf32>
    %c0_12 = arith.constant 0 : index
    %c0_13 = arith.constant 0 : index
    %15 = vector.load %arg6[%c0_12, %c0_13] : memref<128x128xf32, #tpu.memory_space<vmem>>, vector<128x128xf32>
    %cst_14 = arith.constant dense<0.000000e+00> : vector<8x128xf32>
    %16 = tpu.matmul %14, %15, %cst_14 {dimension_numbers = #tpu.dot_dimension_numbers<[1], [0], [0], [1], [0, 0, 1, 1], [], []>} : vector<8x128xf32>, vector<128x128xf32>, vector<8x128xf32> -> vector<8x128xf32>
    %c0_15 = arith.constant 0 : index
    %c0_16 = arith.constant 0 : index
    %17 = vector.load %arg7[%c0_15, %c0_16] : memref<1x128xf32, #tpu.memory_space<vmem>>, vector<1x128xf32>
    %18 = vector.broadcast %17 : vector<1x128xf32> to vector<8x128xf32>
    %19 = arith.addf %16, %18 : vector<8x128xf32>
    %20 = vector.extract_strided_slice %19 {offsets = [0, 0], sizes = [8, 10], strides = [1, 1]} : vector<8x128xf32> to vector<8x10xf32>
    %c0_17 = arith.constant 0 : index
    %c0_18 = arith.constant 0 : index
    %21 = vector.load %arg8[%c0_17, %c0_18] : memref<8x10xf32, #tpu.memory_space<vmem>>, vector<8x10xf32>
    tpu.vector_store %arg8[%c0_17, %c0_18], %20 {strides = array<i32>} : memref<8x10xf32, #tpu.memory_space<vmem>>, vector<8x10xf32>,
    return
  }
  func.func @transform_0(%arg0: i32) -> (i32, i32) {
    %c0_i32 = arith.constant 0 : i32
    %c0_i32_0 = arith.constant 0 : i32
    return %arg0, %c0_i32 : i32, i32
  }
  func.func @transform_1(%arg0: i32) -> (i32, i32) {
    %c0_i32 = arith.constant 0 : i32
    %c0_i32_0 = arith.constant 0 : i32
    %c0_i32_1 = arith.constant 0 : i32
    return %c0_i32, %c0_i32_0 : i32, i32
  }
  func.func @transform_2(%arg0: i32) -> (i32, i32) {
    %c0_i32 = arith.constant 0 : i32
    %c0_i32_0 = arith.constant 0 : i32
    %c0_i32_1 = arith.constant 0 : i32
    return %c0_i32, %c0_i32_0 : i32, i32
  }
  func.func @transform_3(%arg0: i32) -> (i32, i32) {
    %c0_i32 = arith.constant 0 : i32
    %c0_i32_0 = arith.constant 0 : i32
    %c0_i32_1 = arith.constant 0 : i32
    return %c0_i32, %c0_i32_0 : i32, i32
  }
  func.func @transform_4(%arg0: i32) -> (i32, i32) {
    %c0_i32 = arith.constant 0 : i32
    %c0_i32_0 = arith.constant 0 : i32
    %c0_i32_1 = arith.constant 0 : i32
    return %c0_i32, %c0_i32_0 : i32, i32
  }
  func.func @transform_5(%arg0: i32) -> (i32, i32) {
    %c0_i32 = arith.constant 0 : i32
    %c0_i32_0 = arith.constant 0 : i32
    %c0_i32_1 = arith.constant 0 : i32
    return %c0_i32, %c0_i32_0 : i32, i32
  }
  func.func @transform_6(%arg0: i32) -> (i32, i32) {
    %c0_i32 = arith.constant 0 : i32
    %c0_i32_0 = arith.constant 0 : i32
    %c0_i32_1 = arith.constant 0 : i32
    return %c0_i32, %c0_i32_0 : i32, i32
  }
  func.func @transform_7(%arg0: i32) -> (i32, i32) {
    %c0_i32 = arith.constant 0 : i32
    %c0_i32_0 = arith.constant 0 : i32
    return %arg0, %c0_i32 : i32, i32
  }
}

</mosaic_0001>

<bundles_post_ra>
// kernel: tpu_custom_call.1
= control target key start
LH: loop header
LB: loop body
LE: loop exit
PB: predicated region body
PF: predicated region fallthrough
CT: control target
= control target key end

     0   :  { %12 = vsyncpa [#allocation3], 0  ;;  %s1145_s0 = inlined_call_operand.hbm [shape: f32[8,784], index: 0, kind: input, shape index: {}]   ;;  %s1146_s1 = inlined_call_operand.hbm [shape: f32[784,128], index: 1, kind: input, shape index: {}]   ;;  %s1147_s2 = inlined_call_operand.vmem [shape: f32[1,128], index: 2, kind: input, shape index: {}]   ;;  %s1148_s3 = inlined_call_operand.hbm [shape: f32[128,128], index: 3, kind: input, shape index: {}]   ;;  %s1149_s4 = inlined_call_operand.vmem [shape: f32[1,128], index: 4, kind: input, shape index: {}]   ;;  %s1150_s5 = inlined_call_operand.hbm [shape: f32[128,128], index: 5, kind: input, shape index: {}]   ;;  %s1151_s6 = inlined_call_operand.vmem [shape: f32[1,128], index: 6, kind: input, shape index: {}]   ;;  %s1152_s7 = inlined_call_operand.hbm [shape: f32[8,10], index: 7, kind: output, shape index: {}]  }
   0x1   :  { %13 = vsyncpa [#allocation6], 0 }
   0x2   :  { %14 = vsyncpa [#allocation9], 0 }
   0x3   :  { %15 = vsyncpa [#allocation4], 0  ;;  %s1023_s24 = smov [#allocation5]  }
   0x4   :  { %s31_s25 = sshll.u32 %s1023_s24, 4  ;;  %s32_s25 = int_to_ptr.vmem [resolvable:$true] %s31_s25 }
   0x5   :  { %s923_s26 = scalar_lea.vmem %s32_s25, 12544  ;;  %p928_p1 = scmp.lt.s32.totalorder %s32_s25, %s32_s25 }
   0x6   :  { %p924_p0 = scmp.ne.s32.totalorder %s32_s25, %s923_s26  ;;  %p929_p2 = scmp.lt.s32.totalorder %s923_s26, %s923_s26 }
   0x8   :  { %p930_p3 = por %p929_p2, %p928_p1 }
   0xa   :  { %p931_p4 = pnand %p930_p3, %p924_p0 }
   0xc   :  { %934 = shalt.err (!%p931_p4)
}
   0xd   :  { %s1024_s27 = smov 128   ;;  %s1025_s28 = smov 8  }
   0xe   :  { %37 = dma.hbm_to_vmem [thread:$0]  %s1146_s1, 12544, %s32_s25, [#allocation6], %s1024_s27, %s1024_s27, %s1025_s28  }
   0xf   :  { %s1026_s8 = smov [#allocation2]   ;;  %s1027_s10 = smov [#allocation7]  }
  0x10   :  { %s22_s9 = sshll.u32 %s1026_s8, 4  ;;  %s45_s11 = sshll.u32 %s1027_s10, 4  ;;  %s23_s9 = int_to_ptr.vmem [resolvable:$true] %s22_s9  ;;  %s46_s11 = int_to_ptr.vmem [resolvable:$true] %s45_s11 }
  0x11   :  { %s943_s12 = scalar_lea.vmem %s23_s9, 896  ;;  %p948_p6 = scmp.lt.s32.totalorder %s23_s9, %s23_s9 }
  0x12   :  { %p944_p5 = scmp.ne.s32.totalorder %s23_s9, %s943_s12  ;;  %p949_p7 = scmp.lt.s32.totalorder %s943_s12, %s943_s12 }
  0x14   :  { %p950_p8 = por %p949_p7, %p948_p6 }
  0x16   :  { %p951_p9 = pnand %p950_p8, %p944_p5 }
  0x18   :  { %954 = shalt.err (!%p951_p9)
}
  0x19   :  { %25 = dma.hbm_to_vmem [thread:$0]  %s1145_s0, 896, %s23_s9, [#allocation3]  }
  0x1a   :  { %s963_s15 = scalar_lea.vmem %s46_s11, 2048  ;;  %p968_p11 = scmp.lt.s32.totalorder %s46_s11, %s46_s11 }
  0x1b   :  { %p964_p10 = scmp.ne.s32.totalorder %s46_s11, %s963_s15  ;;  %p969_p12 = scmp.lt.s32.totalorder %s963_s15, %s963_s15 }
  0x1d   :  { %p970_p13 = por %p969_p12, %p968_p11 }
  0x1f   :  { %p971_p0 = pnand %p970_p13, %p964_p10 }
  0x21   :  { %974 = shalt.err (!%p971_p0)
}
  0x22   :  { %51 = dma.hbm_to_vmem [thread:$0]  %s1148_s3, 2048, %s46_s11, [#allocation6], %s1024_s27, %s1024_s27, %s1025_s28  }
  0x23   :  { %s1028_s17 = smov [#allocation8]  }
  0x24   :  { %s59_s18 = sshll.u32 %s1028_s17, 4  ;;  %s60_s18 = int_to_ptr.vmem [resolvable:$true] %s59_s18 }
  0x25   :  { %s983_s19 = scalar_lea.vmem %s60_s18, 2048  ;;  %p988_p2 = scmp.lt.s32.totalorder %s60_s18, %s60_s18 }
  0x26   :  { %p984_p1 = scmp.ne.s32.totalorder %s60_s18, %s983_s19  ;;  %p989_p3 = scmp.lt.s32.totalorder %s983_s19, %s983_s19 }
  0x28   :  { %p990_p4 = por %p989_p3, %p988_p2 }
  0x2a   :  { %p991_p5 = pnand %p990_p4, %p984_p1 }
  0x2c   :  { %994 = shalt.err (!%p991_p5)
}
  0x2d   :  { %65 = dma.hbm_to_vmem [thread:$0]  %s1150_s5, 2048, %s60_s18, [#allocation9], %s1024_s27, %s1024_s27, %s1025_s28  }
  0x2e   :  { %1015 = dma.done.wait [#allocation3], 896  }
  0x2f   :  { %1016 = vsyncadd [#allocation3], 4294966400 }
  0x30   :  { %1017 = dma.done.wait [#allocation6], 14592  }
  0x31   :  { %1018 = vsyncadd [#allocation6], 4294952704 }
  0x32   :  { %1019 = dma.done.wait [#allocation9], 2048  }
  0x33   :  { %1020 = vsyncadd [#allocation9], 4294965248  ;;  %v118_v0 = vld [vmem:[#allocation5 + $0xf8] sm:$0xff]  ;;  %v117_v2 = vld [vmem:[#allocation5 + $0xf0] sm:$0xff]  ;;  %vm192_vm0 = vcmask 130048   ;;  %vm1030_vm1 = vmmov 0  }
  0x34   :  { %v102_v1 = vld [vmem:[#allocation5 + $0x78] sm:$0xff]  ;;  %687 = vmatprep.subr.mxu0 %v118_v0  ;;  %v101_v4 = vld [vmem:[#allocation5 + $0x70] sm:$0xff]  ;;  %v116_v6 = vld [vmem:[#allocation5 + $0xe8] sm:$0xff]  ;;  %s1031_s24 = smov [#allocation10]   ;;  %vm664_vm2 = vcmask 80896  }
  0x35   :  { %v150_v3 = vld [vmem:[#allocation5 + $0x1f8] sm:$0xff]  ;;  %688 = vmatpush3.msra.mxu0 %v102_v1  ;;  %v149_v7 = vld [vmem:[#allocation5 + $0x1f0] sm:$0xff]  ;;  %v100_v8 = vld [vmem:[#allocation5 + $0x68] sm:$0xff]  ;;  %s672_s25 = sshll.u32 %s1031_s24, 4  ;;  %s673_s25 = int_to_ptr.vmem [resolvable:$true] %s672_s25 }
  0x36   :  { %v134_v5 = vld [vmem:[#allocation5 + $0x178] sm:$0xff]  ;;  %722 = vmatprep.subr.mxu1 %v150_v3  ;;  %689 = vmatprep.subr.mxu0 %v117_v2  ;;  %v133_v9 = vld [vmem:[#allocation5 + $0x170] sm:$0xff]  ;;  %v148_v10 = vld [vmem:[#allocation5 + $0x1e8] sm:$0xff]  ;;  %s995_s26 = scalar_lea.vmem %s673_s25, 128  ;;  %p1000_p7 = scmp.lt.s32.totalorder %s673_s25, %s673_s25 }
  0x37   :  { %723 = vmatpush3.msra.mxu1 %v134_v5  ;;  %690 = vmatpush3.msra.mxu0 %v101_v4  ;;  %v115_v11 = vld [vmem:[#allocation5 + $0xe0] sm:$0xff]  ;;  %v132_v12 = vld [vmem:[#allocation5 + $0x168] sm:$0xff]  ;;  %v114_v15 = vld [vmem:[#allocation5 + $0xd8] sm:$0xff]  ;;  %p996_p6 = scmp.ne.s32.totalorder %s673_s25, %s995_s26  ;;  %p1001_p8 = scmp.lt.s32.totalorder %s995_s26, %s995_s26 }
  0x38   :  { %724 = vmatprep.subr.mxu1 %v149_v7  ;;  %691 = vmatprep.subr.mxu0 %v116_v6  ;;  %v99_v13 = vld [vmem:[#allocation5 + $0x60] sm:$0xff]  ;;  %v98_v17 = vld [vmem:[#allocation5 + $0x58] sm:$0xff]  ;;  %v113_v19 = vld [vmem:[#allocation5 + $0xd0] sm:$0xff] }
  0x39   :  { %725 = vmatpush3.msra.mxu1 %v133_v9  ;;  %v147_v14 = vld [vmem:[#allocation5 + $0x1e0] sm:$0xff]  ;;  %692 = vmatpush3.msra.mxu0 %v100_v8  ;;  %v146_v18 = vld [vmem:[#allocation5 + $0x1d8] sm:$0xff]  ;;  %v97_v21 = vld [vmem:[#allocation5 + $0x50] sm:$0xff]  ;;  %p1002_p9 = por %p1001_p8, %p1000_p7 }
  0x3a   :  { %726 = vmatprep.subr.mxu1 %v148_v10  ;;  %v131_v16 = vld [vmem:[#allocation5 + $0x160] sm:$0xff]  ;;  %693 = vmatprep.subr.mxu0 %v115_v11  ;;  %v130_v20 = vld [vmem:[#allocation5 + $0x158] sm:$0xff]  ;;  %v145_v22 = vld [vmem:[#allocation5 + $0x1d0] sm:$0xff] }
  0x3b   :  { %727 = vmatpush3.msra.mxu1 %v132_v12  ;;  %694 = vmatpush3.msra.mxu0 %v99_v13  ;;  %v112_v23 = vld [vmem:[#allocation5 + $0xc8] sm:$0xff]  ;;  %v129_v24 = vld [vmem:[#allocation5 + $0x150] sm:$0xff]  ;;  %v111_v27 = vld [vmem:[#allocation5 + $0xc0] sm:$0xff]  ;;  %p1003_p10 = pnand %p1002_p9, %p996_p6 }
  0x3c   :  { %728 = vmatprep.subr.mxu1 %v147_v14  ;;  %695 = vmatprep.subr.mxu0 %v114_v15  ;;  %v96_v25 = vld [vmem:[#allocation5 + $0x48] sm:$0xff]  ;;  %v95_v29 = vld [vmem:[#allocation5 + $0x40] sm:$0xff]  ;;  %v110_v31 = vld [vmem:[#allocation5 + $0xb8] sm:$0xff]  ;;  %v1029_v14 = vmov 0.0  }
  0x3d   :  { %729 = vmatpush3.msra.mxu1 %v131_v16  ;;  %696 = vmatpush3.msra.mxu0 %v98_v17  ;;  %v144_v26 = vld [vmem:[#allocation5 + $0x1c8] sm:$0xff]  ;;  %v143_v30 = vld [vmem:[#allocation5 + $0x1c0] sm:$0xff]  ;;  %v94_v33 = vld [vmem:[#allocation5 + $0x38] sm:$0xff] }
  0x3e   :  { %730 = vmatprep.subr.mxu1 %v146_v18  ;;  %697 = vmatprep.subr.mxu0 %v113_v19  ;;  %v128_v28 = vld [vmem:[#allocation5 + $0x148] sm:$0xff]  ;;  %v127_v32 = vld [vmem:[#allocation5 + $0x140] sm:$0xff]  ;;  %v142_v34 = vld [vmem:[#allocation5 + $0x1b8] sm:$0xff] }
  0x3f   :  { %731 = vmatpush3.msra.mxu1 %v130_v20  ;;  %698 = vmatpush3.msra.mxu0 %v97_v21  ;;  %v109_v35 = vld [vmem:[#allocation5 + $0xb0] sm:$0xff]  ;;  %v126_v36 = vld [vmem:[#allocation5 + $0x138] sm:$0xff]  ;;  %v108_v39 = vld [vmem:[#allocation5 + $0xa8] sm:$0xff] }
  0x40   :  { %732 = vmatprep.subr.mxu1 %v145_v22  ;;  %699 = vmatprep.subr.mxu0 %v112_v23  ;;  %v93_v37 = vld [vmem:[#allocation5 + $0x30] sm:$0xff]  ;;  %v92_v41 = vld [vmem:[#allocation5 + $0x28] sm:$0xff]  ;;  %v107_v43 = vld [vmem:[#allocation5 + $0xa0] sm:$0xff] }
  0x41   :  { %733 = vmatpush3.msra.mxu1 %v129_v24  ;;  %700 = vmatpush3.msra.mxu0 %v96_v25  ;;  %v141_v38 = vld [vmem:[#allocation5 + $0x1b0] sm:$0xff]  ;;  %v140_v42 = vld [vmem:[#allocation5 + $0x1a8] sm:$0xff]  ;;  %v91_v45 = vld [vmem:[#allocation5 + $0x20] sm:$0xff] }
  0x42   :  { %734 = vmatprep.subr.mxu1 %v144_v26  ;;  %701 = vmatprep.subr.mxu0 %v111_v27  ;;  %v125_v40 = vld [vmem:[#allocation5 + $0x130] sm:$0xff]  ;;  %v124_v44 = vld [vmem:[#allocation5 + $0x128] sm:$0xff]  ;;  %v139_v46 = vld [vmem:[#allocation5 + $0x1a0] sm:$0xff] }
  0x43   :  { %735 = vmatpush3.msra.mxu1 %v128_v28  ;;  %702 = vmatpush3.msra.mxu0 %v95_v29  ;;  %v106_v47 = vld [vmem:[#allocation5 + $0x98] sm:$0xff]  ;;  %v123_v48 = vld [vmem:[#allocation5 + $0x120] sm:$0xff]  ;;  %v105_v51 = vld [vmem:[#allocation5 + $0x90] sm:$0xff] }
  0x44   :  { %736 = vmatprep.subr.mxu1 %v143_v30  ;;  %703 = vmatprep.subr.mxu0 %v110_v31  ;;  %v90_v49 = vld [vmem:[#allocation5 + $0x18] sm:$0xff]  ;;  %v89_v53 = vld [vmem:[#allocation5 + $0x10] sm:$0xff]  ;;  %v104_v55 = vld [vmem:[#allocation5 + $0x88] sm:$0xff] }
  0x45   :  { %737 = vmatpush3.msra.mxu1 %v127_v32  ;;  %704 = vmatpush3.msra.mxu0 %v94_v33  ;;  %v138_v50 = vld [vmem:[#allocation5 + $0x198] sm:$0xff]  ;;  %v137_v54 = vld [vmem:[#allocation5 + $0x190] sm:$0xff]  ;;  %v88_v57 = vld [vmem:[#allocation5 + $0x8] sm:$0xff] }
  0x46   :  { %738 = vmatprep.subr.mxu1 %v142_v34  ;;  %705 = vmatprep.subr.mxu0 %v109_v35  ;;  %v122_v52 = vld [vmem:[#allocation5 + $0x118] sm:$0xff]  ;;  %v121_v56 = vld [vmem:[#allocation5 + $0x110] sm:$0xff]  ;;  %v136_v58 = vld [vmem:[#allocation5 + $0x188] sm:$0xff] }
  0x47   :  { %739 = vmatpush3.msra.mxu1 %v126_v36  ;;  %706 = vmatpush3.msra.mxu0 %v93_v37  ;;  %v103_v59 = vld [vmem:[#allocation5 + $0x80] sm:$0xff]  ;;  %v81_v60 = vld [vmem:[#allocation2 + $0x8] sm:$0xff]  ;;  %v120_v62 = vld [vmem:[#allocation5 + $0x108] sm:$0xff] }
  0x48   :  { %740 = vmatprep.subr.mxu1 %v141_v38  ;;  %707 = vmatprep.subr.mxu0 %v108_v39  ;;  %v87_v61 = vld [vmem:[#allocation5] sm:$0xff]  ;;  %v80_v63 = vld [vmem:[#allocation2] sm:$0xff]  ;;  %v182_v1 = vld [vmem:[#allocation5 + $0x2f8] sm:$0xff] }
  0x49   :  { %741 = vmatpush3.msra.mxu1 %v125_v40  ;;  %708 = vmatpush3.msra.mxu0 %v92_v41  ;;  %v135_v0 = vld [vmem:[#allocation5 + $0x180] sm:$0xff]  ;;  %v166_v4 = vld [vmem:[#allocation5 + $0x278] sm:$0xff]  ;;  %v181_v6 = vld [vmem:[#allocation5 + $0x2f0] sm:$0xff] }
  0x4a   :  { %742 = vmatprep.subr.mxu1 %v140_v42  ;;  %709 = vmatprep.subr.mxu0 %v107_v43  ;;  %v119_v2 = vld [vmem:[#allocation5 + $0x100] sm:$0xff]  ;;  %v82_v5 = vld [vmem:[#allocation2 + $0x10] sm:$0xff]  ;;  %v165_v7 = vld [vmem:[#allocation5 + $0x270] sm:$0xff] }
  0x4b   :  { %743 = vmatpush3.msra.mxu1 %v124_v44  ;;  %710 = vmatpush3.msra.mxu0 %v91_v45  ;;  %v83_v3 = vld [vmem:[#allocation2 + $0x18] sm:$0xff]  ;;  %v85_v8 = vld [vmem:[#allocation2 + $0x28] sm:$0xff]  ;;  %v180_v9 = vld [vmem:[#allocation5 + $0x2e8] sm:$0xff] }
  0x4c   :  { %744 = vmatprep.subr.mxu1 %v139_v46  ;;  %711 = vmatprep.subr.mxu0 %v106_v47  ;;  %v164_v10 = vld [vmem:[#allocation5 + $0x268] sm:$0xff]  ;;  %v179_v12 = vld [vmem:[#allocation5 + $0x2e0] sm:$0xff]  ;;  %v178_v16 = vld [vmem:[#allocation5 + $0x2d8] sm:$0xff] }
  0x4d   :  { %745 = vmatpush3.msra.mxu1 %v123_v48  ;;  %712 = vmatpush3.msra.mxu0 %v90_v49  ;;  %v184_v11 = vld [vmem:[#allocation5 + $0x308] sm:$0xff]  ;;  %v163_v13 = vld [vmem:[#allocation5 + $0x260] sm:$0xff]  ;;  %v162_v17 = vld [vmem:[#allocation5 + $0x258] sm:$0xff] }
  0x4e   :  { %746 = vmatprep.subr.mxu1 %v138_v50  ;;  %713 = vmatprep.subr.mxu0 %v105_v51  ;;  %v183_v15 = vld [vmem:[#allocation5 + $0x300] sm:$0xff]  ;;  %v86_v18 = vld [vmem:[#allocation2 + $0x30] sm:$0xff]  ;;  %v177_v19 = vld [vmem:[#allocation5 + $0x2d0] sm:$0xff] }
  0x4f   :  { %747 = vmatpush3.msra.mxu1 %v122_v52  ;;  %714 = vmatpush3.msra.mxu0 %v89_v53  ;;  %v161_v20 = vld [vmem:[#allocation5 + $0x250] sm:$0xff]  ;;  %v176_v21 = vld [vmem:[#allocation5 + $0x2c8] sm:$0xff]  ;;  %v175_v23 = vld [vmem:[#allocation5 + $0x2c0] sm:$0xff] }
  0x50   :  { %748 = vmatprep.subr.mxu1 %v137_v54  ;;  %715 = vmatprep.subr.mxu0 %v104_v55  ;;  %v160_v22 = vld [vmem:[#allocation5 + $0x248] sm:$0xff]  ;;  %v159_v24 = vld [vmem:[#allocation5 + $0x240] sm:$0xff]  ;;  %v174_v25 = vld [vmem:[#allocation5 + $0x2b8] sm:$0xff] }
  0x51   :  { %749 = vmatpush3.msra.mxu1 %v121_v56  ;;  %716 = vmatpush3.msra.mxu0 %v88_v57  ;;  %v158_v26 = vld [vmem:[#allocation5 + $0x238] sm:$0xff]  ;;  %v173_v27 = vld [vmem:[#allocation5 + $0x2b0] sm:$0xff]  ;;  %v172_v29 = vld [vmem:[#allocation5 + $0x2a8] sm:$0xff] }
  0x52   :  { %750 = vmatprep.subr.mxu1 %v136_v58  ;;  %717 = vmatprep.subr.mxu0 %v103_v59  ;;  %v157_v28 = vld [vmem:[#allocation5 + $0x230] sm:$0xff]  ;;  %v156_v30 = vld [vmem:[#allocation5 + $0x228] sm:$0xff]  ;;  %v171_v31 = vld [vmem:[#allocation5 + $0x2a0] sm:$0xff] }
  0x53   :  { %260 = vmatprep.mubr.f32.mxu0 %v81_v60  ;;  %718 = vmatpush3.msra.mxu0 %v87_v61  ;;  %v155_v32 = vld [vmem:[#allocation5 + $0x220] sm:$0xff]  ;;  %v170_v33 = vld [vmem:[#allocation5 + $0x298] sm:$0xff]  ;;  %v169_v35 = vld [vmem:[#allocation5 + $0x290] sm:$0xff] }
  0x54   :  { %751 = vmatpush3.msra.mxu1 %v120_v62  ;;  %261 = vmatmul.mubr.f32.vlgmr.msra.gmra.mxu0 %v80_v63  ;;  %v154_v34 = vld [vmem:[#allocation5 + $0x218] sm:$0xff]  ;;  %v153_v36 = vld [vmem:[#allocation5 + $0x210] sm:$0xff]  ;;  %v168_v37 = vld [vmem:[#allocation5 + $0x288] sm:$0xff] }
  0x55   :  { %752 = vmatprep.subr.mxu1 %v135_v0  ;;  %757 = vmatprep.subr.mxu0 %v182_v1  ;;  %v152_v38 = vld [vmem:[#allocation5 + $0x208] sm:$0xff]  ;;  %v167_v39 = vld [vmem:[#allocation5 + $0x280] sm:$0xff]  ;;  %v490_v44 = vld [vmem:[#allocation7 + $0x68] sm:$0xff] }
  0x56   :  { %753 = vmatpush3.msra.mxu1 %v119_v2  ;;  %330 = vmatprep.mubr.f32.mxu1 %v83_v3  ;;  %v151_v40 = vld [vmem:[#allocation5 + $0x200] sm:$0xff]  ;;  %v84_v41 = vld [vmem:[#allocation2 + $0x20] sm:$0xff]  ;;  %v489_v45 = vld [vmem:[#allocation7 + $0x60] sm:$0xff] }
  0x57   :  { %758 = vmatpush3.msra.mxu0 %v166_v4  ;;  %331 = vmatmul.mubr.f32.vlgmr.msra.gmra.mxu1 %v82_v5  ;;  %v492_v42 = vld [vmem:[#allocation7 + $0x78] sm:$0xff]  ;;  %v491_v43 = vld [vmem:[#allocation7 + $0x70] sm:$0xff]  ;;  %v486_v48 = vld [vmem:[#allocation7 + $0x48] sm:$0xff] }
  0x58   :  { %759 = vmatprep.subr.mxu0 %v181_v6  ;;  %400 = vmatprep.mubr.f32.mxu0 %v85_v8  ;;  %v488_v46 = vld [vmem:[#allocation7 + $0x58] sm:$0xff]  ;;  %v487_v47 = vld [vmem:[#allocation7 + $0x50] sm:$0xff]  ;;  %v485_v49 = vld [vmem:[#allocation7 + $0x40] sm:$0xff] }
  0x59   :  { %760 = vmatpush3.msra.mxu0 %v165_v7  ;;  %829 = vmatprep.subr.mxu1 %v1029_v14  ;;  %v484_v50 = vld [vmem:[#allocation7 + $0x38] sm:$0xff]  ;;  %v483_v51 = vld [vmem:[#allocation7 + $0x30] sm:$0xff]  ;;  %v482_v52 = vld [vmem:[#allocation7 + $0x28] sm:$0xff] }
  0x5a   :  { %761 = vmatprep.subr.mxu0 %v180_v9  ;;  %830 = vmatpush3.msra.mxu1 %v184_v11  ;;  %v481_v53 = vld [vmem:[#allocation7 + $0x20] sm:$0xff]  ;;  %v480_v54 = vld [vmem:[#allocation7 + $0x18] sm:$0xff]  ;;  %v479_v55 = vld [vmem:[#allocation7 + $0x10] sm:$0xff] }
  0x5b   :  { %762 = vmatpush3.msra.mxu0 %v164_v10  ;;  %831 = vmatprep.subr.mxu1 %v1029_v14  ;;  %v478_v56 = vld [vmem:[#allocation7 + $0x8] sm:$0xff]  ;;  %v477_v57 = vld [vmem:[#allocation7] sm:$0xff]  ;;  %v586_v58 = vld [vmem:[#allocation8 + $0x78] sm:$0xff] }
  0x5c   :  { %763 = vmatprep.subr.mxu0 %v179_v12  ;;  %832 = vmatpush3.msra.mxu1 %v183_v15  ;;  %v585_v59 = vld [vmem:[#allocation8 + $0x70] sm:$0xff]  ;;  %v584_v60 = vld [vmem:[#allocation8 + $0x68] sm:$0xff]  ;;  %v583_v61 = vld [vmem:[#allocation8 + $0x60] sm:$0xff] }
  0x5d   :  { %764 = vmatpush3.msra.mxu0 %v163_v13  ;;  %833 = vmatprep.mubr.msk.f32.mxu1 %vm1030_vm1, %v1029_v14  ;;  %v582_v62 = vld [vmem:[#allocation8 + $0x58] sm:$0xff]  ;;  %v581_v63 = vld [vmem:[#allocation8 + $0x50] sm:$0xff]  ;;  %v580_v0 = vld [vmem:[#allocation8 + $0x48] sm:$0xff] }
  0x5e   :  { %765 = vmatprep.subr.mxu0 %v178_v16  ;;  %834 = vmatmul.mubr.msk.f32.vlgmr.msra.gmra.mxu1 %vm192_vm0, %v86_v18  ;;  %v579_v1 = vld [vmem:[#allocation8 + $0x40] sm:$0xff]  ;;  %v578_v2 = vld [vmem:[#allocation8 + $0x38] sm:$0xff]  ;;  %v577_v3 = vld [vmem:[#allocation8 + $0x30] sm:$0xff] }
  0x5f   :  { %766 = vmatpush3.msra.mxu0 %v162_v17  ;;  %836 = vmatprep.subr.mxu1 %v1029_v14  ;;  %v576_v4 = vld [vmem:[#allocation8 + $0x28] sm:$0xff]  ;;  %v575_v5 = vld [vmem:[#allocation8 + $0x20] sm:$0xff]  ;;  %v574_v6 = vld [vmem:[#allocation8 + $0x18] sm:$0xff] }
  0x60   :  { %767 = vmatprep.subr.mxu0 %v177_v19  ;;  %868 = vmatprep.mubr.msk.f32.mxu1 %vm1030_vm1, %v1029_v14  ;;  %v683_v15 = vld [vmem:[%s1147_s2] ss:$0 sm:$0xff] }
  0x61   :  { %768 = vmatpush3.msra.mxu0 %v161_v20  ;;  %837 = vmatpush3.msra.mxu1 %v492_v42 }
  0x62   :  { %769 = vmatprep.subr.mxu0 %v176_v21  ;;  %838 = vmatprep.subr.mxu1 %v1029_v14 }
  0x63   :  { %770 = vmatpush3.msra.mxu0 %v160_v22  ;;  %839 = vmatpush3.msra.mxu1 %v491_v43 }
  0x64   :  { %771 = vmatprep.subr.mxu0 %v175_v23  ;;  %840 = vmatprep.subr.mxu1 %v1029_v14 }
  0x65   :  { %772 = vmatpush3.msra.mxu0 %v159_v24  ;;  %841 = vmatpush3.msra.mxu1 %v490_v44 }
  0x66   :  { %773 = vmatprep.subr.mxu0 %v174_v25  ;;  %842 = vmatprep.subr.mxu1 %v1029_v14  ;;  %v573_v25 = vld [vmem:[#allocation8 + $0x10] sm:$0xff] }
  0x67   :  { %774 = vmatpush3.msra.mxu0 %v158_v26  ;;  %843 = vmatpush3.msra.mxu1 %v489_v45  ;;  %v572_v26 = vld [vmem:[#allocation8 + $0x8] sm:$0xff] }
  0x68   :  { %775 = vmatprep.subr.mxu0 %v173_v27  ;;  %844 = vmatprep.subr.mxu1 %v1029_v14  ;;  %v571_v27 = vld [vmem:[#allocation8] sm:$0xff] }
  0x69   :  { %776 = vmatpush3.msra.mxu0 %v157_v28  ;;  %845 = vmatpush3.msra.mxu1 %v488_v46  ;;  %v685_v28 = vld [vmem:[%s1149_s4] ss:$0 sm:$0xff] }
  0x6a   :  { %777 = vmatprep.subr.mxu0 %v172_v29  ;;  %846 = vmatprep.subr.mxu1 %v1029_v14 }
  0x6b   :  { %778 = vmatpush3.msra.mxu0 %v156_v30  ;;  %847 = vmatpush3.msra.mxu1 %v487_v47 }
  0x6c   :  { %779 = vmatprep.subr.mxu0 %v171_v31  ;;  %848 = vmatprep.subr.mxu1 %v1029_v14 }
  0x6d   :  { %780 = vmatpush3.msra.mxu0 %v155_v32  ;;  %849 = vmatpush3.msra.mxu1 %v486_v48 }
  0x6e   :  { %781 = vmatprep.subr.mxu0 %v170_v33  ;;  %850 = vmatprep.subr.mxu1 %v1029_v14  ;;  %v686_v33 = vld [vmem:[%s1151_s6] ss:$0 sm:$0xff] }
  0x6f   :  { %782 = vmatpush3.msra.mxu0 %v154_v34  ;;  %851 = vmatpush3.msra.mxu1 %v485_v49 }
  0x70   :  { %783 = vmatprep.subr.mxu0 %v169_v35  ;;  %852 = vmatprep.subr.mxu1 %v1029_v14 }
  0x71   :  { %784 = vmatpush3.msra.mxu0 %v153_v36  ;;  %853 = vmatpush3.msra.mxu1 %v484_v50 }
  0x72   :  { %785 = vmatprep.subr.mxu0 %v168_v37  ;;  %854 = vmatprep.subr.mxu1 %v1029_v14 }
  0x73   :  { %786 = vmatpush3.msra.mxu0 %v152_v38  ;;  %855 = vmatpush3.msra.mxu1 %v483_v51 }
  0x74   :  { %787 = vmatprep.subr.mxu0 %v167_v39  ;;  %856 = vmatprep.subr.mxu1 %v1029_v14 }
  0x75   :  { %788 = vmatpush3.msra.mxu0 %v151_v40  ;;  %857 = vmatpush3.msra.mxu1 %v482_v52 }
  0x76   :  { %401 = vmatmul.mubr.f32.vlgmr.msra.gmra.mxu0 %v84_v41  ;;  %871 = vmatprep.subr.mxu0 %v1029_v14 }
  0x77   :  { %903 = vmatprep.mubr.msk.f32.mxu0 %vm1030_vm1, %v1029_v14  ;;  %858 = vmatprep.subr.mxu1 %v1029_v14 }
  0x78   :  { %859 = vmatpush3.msra.mxu1 %v481_v53  ;;  %872 = vmatpush3.msra.mxu0 %v586_v58 }
  0x79   :  { %860 = vmatprep.subr.mxu1 %v1029_v14  ;;  %873 = vmatprep.subr.mxu0 %v1029_v14 }
  0x7a   :  { %861 = vmatpush3.msra.mxu1 %v480_v54  ;;  %874 = vmatpush3.msra.mxu0 %v585_v59 }
  0x7b   :  { %862 = vmatprep.subr.mxu1 %v1029_v14  ;;  %875 = vmatprep.subr.mxu0 %v1029_v14 }
  0x7c   :  { %863 = vmatpush3.msra.mxu1 %v479_v55  ;;  %876 = vmatpush3.msra.mxu0 %v584_v60 }
  0x7d   :  { %864 = vmatprep.subr.mxu1 %v1029_v14  ;;  %877 = vmatprep.subr.mxu0 %v1029_v14 }
  0x7e   :  { %865 = vmatpush3.msra.mxu1 %v478_v56  ;;  %878 = vmatpush3.msra.mxu0 %v583_v61 }
  0x7f   :  { %866 = vmatprep.subr.mxu1 %v1029_v14  ;;  %879 = vmatprep.subr.mxu0 %v1029_v14 }
  0x80   :  { %867 = vmatpush3.msra.mxu1 %v477_v57  ;;  %880 = vmatpush3.msra.mxu0 %v582_v62 }
  0x81   :  { %881 = vmatprep.subr.mxu0 %v1029_v14 }
  0x82   :  { %882 = vmatpush3.msra.mxu0 %v581_v63 }
  0x83   :  { %883 = vmatprep.subr.mxu0 %v1029_v14 }
  0x84   :  { %884 = vmatpush3.msra.mxu0 %v580_v0 }
  0x85   :  { %885 = vmatprep.subr.mxu0 %v1029_v14 }
  0x86   :  { %886 = vmatpush3.msra.mxu0 %v579_v1 }
  0x87   :  { %887 = vmatprep.subr.mxu0 %v1029_v14 }
  0x88   :  { %888 = vmatpush3.msra.mxu0 %v578_v2 }
  0x89   :  { %889 = vmatprep.subr.mxu0 %v1029_v14 }
  0x8a   :  { %890 = vmatpush3.msra.mxu0 %v577_v3 }
  0x8b   :  { %891 = vmatprep.subr.mxu0 %v1029_v14 }
  0x8c   :  { %892 = vmatpush3.msra.mxu0 %v576_v4 }
  0x8d   :  { %893 = vmatprep.subr.mxu0 %v1029_v14 }
  0x8e   :  { %894 = vmatpush3.msra.mxu0 %v575_v5 }
  0x8f   :  { %895 = vmatprep.subr.mxu0 %v1029_v14 }
  0x90   :  { %896 = vmatpush3.msra.mxu0 %v574_v6 }
  0x91   :  { %897 = vmatprep.subr.mxu0 %v1029_v14 }
  0x92   :  { %898 = vmatpush3.msra.mxu0 %v573_v25 }
  0x93   :  { %899 = vmatprep.subr.mxu0 %v1029_v14 }
  0x94   :  { %900 = vmatpush3.msra.mxu0 %v572_v26 }
  0x95   :  { %901 = vmatprep.subr.mxu0 %v1029_v14 }
  0x96   :  { %902 = vmatpush3.msra.mxu0 %v571_v27 }
 0x114   :  { %v719_v11 = vpop.f32.mrf.mxu0 }
 0x116   :  { %v720_v12 = vpop.f32.mrf.mxu0 }
 0x117   :  { %v754_v7 = vpop.f32.mrf.mxu1  ;;  %v721_v13 = vadd.f32 %v720_v12, %v719_v11 }
 0x119   :  { %v755_v8 = vpop.f32.mrf.mxu1  ;;  %v263_v16 = vadd.f32 %v721_v13, %v683_v15 }
 0x11a   :  { %v756_v17 = vadd.f32 %v755_v8, %v754_v7 }
 0x11c   :  { %v333_v20 = vadd.f32 %v756_v17, %v263_v16 }
 0x11e   :  { %v472_v9 = vpop.f32.mrf.mxu1 }
 0x120   :  { %v835_v10 = vpop.f32.mrf.mxu1 }
 0x136   :  { %v789_v18 = vpop.f32.mrf.mxu0 }
 0x138   :  { %v790_v19 = vpop.f32.mrf.mxu0 }
 0x139   :  { %v791_v21 = vadd.f32 %v790_v19, %v789_v18 }
 0x13b   :  { %v403_v22 = vadd.f32 %v791_v21, %v333_v20 }
 0x13d   :  { %v473_v23 = vadd.f32 %v472_v9, %v403_v22 }
 0x13f   :  { %v476_v24 = vmax.f32 %v473_v23, 0.0 }
 0x141   :  { %869 = vmatmul.mubr.f32.vlgmr.msra.gmra.mxu1 %v476_v24 }
 0x201   :  { %v566_v29 = vpop.f32.mrf.mxu1 }
 0x202   :  { %v567_v30 = vadd.f32 %v685_v28, %v566_v29 }
 0x203   :  { %v870_v31 = vpop.f32.mrf.mxu1 }
 0x204   :  { %v570_v32 = vmax.f32 %v567_v30, 0.0 }
 0x206   :  { %904 = vmatmul.mubr.f32.vlgmr.msra.gmra.mxu0 %v570_v32 }
 0x2c6   :  { %v660_v34 = vpop.f32.mrf.mxu0 }
 0x2c7   :  { %v661_v14 = vadd.f32 %v686_v33, %v660_v34 }
 0x2c8   :  { %v905_v35 = vpop.f32.mrf.mxu0 }
 0x2c9   :  { %665 = vst.msk [vmem:[#allocation10] sm:$0xff] %vm664_vm2, %v661_v14 }
 0x2ca   :  { %1006 = shalt.err (!%p1003_p10)
}
 0x2cb   :  { %675 = dma.vmem_to_hbm [thread:$0]  %s673_s25, 128, %s1152_s7, [#allocation4]  }
 0x2cc   :  { %1021 = dma.done.wait [#allocation4], 128  }
 0x2cd   :  { %1022 = vsyncadd [#allocation4], 4294967168 }
 0x2ce   :  { %679 = vsyncpa [#allocation3], 1 }
 0x2cf   :  { %680 = vsyncpa [#allocation6], 1 }
 0x2d0   :  { %681 = vsyncpa [#allocation9], 1 }
 0x2d1   :  { %682 = vsyncpa [#allocation4], 1 }

</bundles_post_ra>
